<compile_context>
chip_gen: v6e
topology: v6e:2x2x1
jax: 0.10.0
libtpu: 0.0.40
codegen_flags: <defaults>
</compile_context>

<pallas_src>
import jax
import jax.numpy as jnp
from jax.experimental import pallas as pl
from jax.experimental.pallas import tpu as pltpu

LANE = 128      # lane width (last dim of lane-dense blocks)
SUBLANE = 8     # sublane width (batch tile granularity)


def _round_up(a, b):
    return ((a + b - 1) // b) * b


def _pad_hidden(d):
    # Lane-dense hidden width.  When d > 128, round to 256 so the 256-wide
    # v6e/v7x MXU is filled (v5e's 128-wide MXU just runs two passes).
    if d <= LANE:
        return LANE
    return _round_up(d, 2 * LANE)


def _pad2(a, rows, cols):
    r, c = a.shape
    return jnp.pad(a, ((0, rows - r), (0, cols - c)))


def _branch_net_kernel(x_ref, w1_ref, b1_ref, w2_ref, b2_ref, w3_ref, b3_ref,
                       o_ref):
    cdt = w1_ref.dtype  # compute dtype for MXU inputs (bf16 default, or f32)
    # Layer 1: Linear(input -> hidden) + Tanh  (f32 accumulate, f32 bias/tanh)
    h = jnp.tanh(
        jnp.dot(x_ref[...].astype(cdt), w1_ref[...],
                preferred_element_type=jnp.float32) + b1_ref[...])
    # Layer 2: Linear(hidden -> hidden) + Tanh
    h = jnp.tanh(
        jnp.dot(h.astype(cdt), w2_ref[...],
                preferred_element_type=jnp.float32) + b2_ref[...])
    # Layer 3: Linear(hidden -> output) + Tanh
    # Direct out_dim-wide store: one pass over the output, no external slice.
    o_ref[...] = jnp.tanh(
        jnp.dot(h.astype(cdt), w3_ref[...],
                preferred_element_type=jnp.float32) + b3_ref[...]
    ).astype(o_ref.dtype)


def prepare_branch_net_params(params, precision="bf16"):
    """Pad (hidden dim only) + cast the parameters ONCE; reuse across calls.

    params: dict w1 (in,hid), b1 (1,hid), w2 (hid,hid), b2 (1,hid),
            w3 (hid,out), b3 (1,out)  — PyTorch-Linear semantics y = x @ W + b.
    """
    compute_dtype = jnp.bfloat16 if precision == "bf16" else jnp.float32
    in_dim, hid = params["w1"].shape
    out_dim = params["w3"].shape[1]
    hid_p = _pad_hidden(hid)
    return dict(
        # Weights in compute dtype (bf16 halves resident VMEM + HBM traffic).
        w1=_pad2(params["w1"].astype(jnp.float32), in_dim, hid_p).astype(compute_dtype),
        w2=_pad2(params["w2"].astype(jnp.float32), hid_p, hid_p).astype(compute_dtype),
        w3=_pad2(params["w3"].astype(jnp.float32), hid_p, out_dim).astype(compute_dtype),
        # Biases stay f32: bias add + tanh run in f32 (required on v5e).
        b1=_pad2(params["b1"].astype(jnp.float32), 1, hid_p),
        b2=_pad2(params["b2"].astype(jnp.float32), 1, hid_p),
        b3=params["b3"].astype(jnp.float32),
        dims=(in_dim, hid, out_dim, hid_p),
        compute_dtype=compute_dtype,
    )


def branch_net_forward(x, prepared, *, tm_max=1024, out_dtype=jnp.float32,
                       single_buffer_weights=True):
    """Branch_net forward: x (B, in_dim) f32 -> (B, out_dim) out_dtype."""
    in_dim, hid, out_dim, hid_p = prepared["dims"]
    B = x.shape[0]
    assert x.shape[1] == in_dim, "x feature dim mismatch"
    x = x.astype(jnp.float32)

    # Balanced batch tiles (avoids ~2x padding blowup for awkward B) and
    # >= 2 grid steps when possible so v7x's two TensorCores both get work.
    num_tiles = max(pl.cdiv(B, tm_max), 2 if B >= 2 * SUBLANE else 1)
    tm = _round_up(pl.cdiv(B, num_tiles), SUBLANE)
    grid = (pl.cdiv(B, tm),)

    w_bytes = jnp.dtype(prepared["compute_dtype"]).itemsize
    o_bytes = jnp.dtype(out_dtype).itemsize
    weight_bytes = (w_bytes * (in_dim * hid_p + hid_p * hid_p + hid_p * out_dim)
                    + 4 * (2 * hid_p + out_dim))

    # CostEstimate on logical (un-padded) dims — advisory for XLA scheduling.
    cost = pl.CostEstimate(
        flops=2 * B * (in_dim * hid + hid * hid + hid * out_dim),
        transcendentals=B * (2 * hid + out_dim),
        bytes_accessed=4 * B * in_dim + o_bytes * B * out_dim + weight_bytes,
    )

    _const = lambda i: (0, 0)   # weights/biases resident across all grid steps
    _xmap = lambda i: (i, 0)    # batch-tiled activations

    def run(single_buffer):
        n_buf = 1 if single_buffer else 2
        # Tight VMEM request: resident weights (x buffers) + double-buffered
        # x/out tiles + f32 intermediate headroom + slack; capped at 48 MiB so
        # we never ask for v7x's entire 64 MiB per-TC VMEM.
        act_bytes = 2 * tm * (4 * in_dim + o_bytes * out_dim)
        scratch_bytes = 2 * 4 * tm * hid_p
        vmem_limit = int(min(48 << 20,
                             max(8 << 20,
                                 n_buf * weight_bytes + act_bytes
                                 + scratch_bytes + (4 << 20))))

        def wspec(shape):
            if single_buffer:
                # Constant-index resident weights: single buffer halves VMEM.
                return pl.BlockSpec(shape, _const, pipeline_mode=pl.Buffered(1))
            return pl.BlockSpec(shape, _const)

        grid_spec = pltpu.PrefetchScalarGridSpec(
            num_scalar_prefetch=0,
            grid=grid,
            in_specs=[
                pl.BlockSpec((tm, in_dim), _xmap),   # x tile (auto-pipelined)
                wspec((in_dim, hid_p)),              # w1 (resident)
                wspec((1, hid_p)),                   # b1
                wspec((hid_p, hid_p)),               # w2
                wspec((1, hid_p)),                   # b2
                wspec((hid_p, out_dim)),             # w3
                wspec((1, out_dim)),                 # b3
            ],
            out_specs=pl.BlockSpec((tm, out_dim), _xmap),
        )
        return pl.pallas_call(
            _branch_net_kernel,
            out_shape=jax.ShapeDtypeStruct((B, out_dim), out_dtype),
            grid_spec=grid_spec,
            compiler_params=pltpu.CompilerParams(
                dimension_semantics=("parallel",),   # megacore-shard batch tiles
                vmem_limit_bytes=vmem_limit,
            ),
            cost_estimate=cost,
        )(x, prepared["w1"], prepared["b1"], prepared["w2"], prepared["b2"],
          prepared["w3"], prepared["b3"])

    if single_buffer_weights:
        try:
            return run(True)
        except Exception:
            # pl.Buffered(1) not accepted by this jax/Mosaic build — fall back
            # to default double-buffered resident weights (same semantics).
            return run(False)
    return run(False)


def init_params(key, input_dim, hidden_dim, output_dim):
    """Deterministic synthetic init (uniform, PyTorch-Linear-like bounds)."""
    ks = jax.random.split(key, 6)

    def lin(kw, kb, fan_in, fan_out):
        bound = 1.0 / jnp.sqrt(fan_in)
        w = jax.random.uniform(kw, (fan_in, fan_out), jnp.float32, -bound, bound)
        b = jax.random.uniform(kb, (1, fan_out), jnp.float32, -bound, bound)
        return w, b

    w1, b1 = lin(ks[0], ks[1], input_dim, hidden_dim)
    w2, b2 = lin(ks[2], ks[3], hidden_dim, hidden_dim)
    w3, b3 = lin(ks[4], ks[5], hidden_dim, output_dim)
    return dict(w1=w1, b1=b1, w2=w2, b2=b2, w3=w3, b3=b3)


def branch_net_ref(x, p):
    """Pure-JAX reference for correctness checks."""
    h = jnp.tanh(x @ p["w1"] + p["b1"])
    h = jnp.tanh(h @ p["w2"] + p["b2"])
    return jnp.tanh(h @ p["w3"] + p["b3"])


if __name__ == "__main__":
    # Small shapes consistent with Branch_net(input, hidden, output).
    batch, input_dim, hidden_dim, output_dim = 8, 16, 32, 8

    key = jax.random.PRNGKey(0)
    k_x, k_p = jax.random.split(key)
    x = jax.random.normal(k_x, (batch, input_dim), dtype=jnp.float32)
    params = init_params(k_p, input_dim, hidden_dim, output_dim)
    ref = branch_net_ref(x, params)

    # Exact f32 path: must match the reference tightly.
    prep_f32 = prepare_branch_net_params(params, precision="float32")
    out_f32 = jax.block_until_ready(branch_net_forward(x, prep_f32))
    assert out_f32.shape == (batch, output_dim)
    assert jnp.allclose(out_f32, ref, atol=1e-5, rtol=1e-5), "f32 mismatch (small batch)"

    # Default bf16-matmul path: looser tolerance (bf16 inputs, f32 accumulate).
    prep_bf16 = prepare_branch_net_params(params, precision="bf16")
    out_bf16 = jax.block_until_ready(branch_net_forward(x, prep_bf16))
    assert out_bf16.shape == (batch, output_dim)
    assert jnp.allclose(out_bf16, ref, atol=3e-2, rtol=3e-2), "bf16 mismatch (small batch)"

    # Larger, non-divisible batch: exercises the multi-step grid, balanced
    # tiles, and the masked trailing batch tile (no wrapper pad/slice).
    xb = jax.random.normal(k_x, (1000, input_dim), dtype=jnp.float32)
    refb = branch_net_ref(xb, params)

    outb_f32 = jax.block_until_ready(branch_net_forward(xb, prep_f32))
    assert outb_f32.shape == (1000, output_dim)
    assert jnp.allclose(outb_f32, refb, atol=1e-5, rtol=1e-5), "f32 mismatch (large batch)"

    outb_bf16 = jax.block_until_ready(branch_net_forward(xb, prep_bf16))
    assert outb_bf16.shape == (1000, output_dim)
    assert jnp.allclose(outb_bf16, refb, atol=3e-2, rtol=3e-2), "bf16 mismatch (large batch)"

    print("KERNEL_OK")
</pallas_src>

<mosaic_0001>
module attributes {stable_mosaic.version = 11 : i64} {
  func.func @_branch_net_kernel(%arg0: i32, %arg1: memref<8x16xf32, #tpu.memory_space<vmem>>, %arg2: memref<16x128xf32, #tpu.memory_space<vmem>>, %arg3: memref<1x128xf32, #tpu.memory_space<vmem>>, %arg4: memref<128x128xf32, #tpu.memory_space<vmem>>, %arg5: memref<1x128xf32, #tpu.memory_space<vmem>>, %arg6: memref<128x8xf32, #tpu.memory_space<vmem>>, %arg7: memref<1x8xf32, #tpu.memory_space<vmem>>, %arg8: memref<8x8xf32, #tpu.memory_space<vmem>>) attributes {dimension_semantics = [#tpu.dimension_semantics<parallel>], iteration_bounds = array<i64: 1>, scalar_prefetch = 0 : i64, scratch_operands = 0 : i64, tpu.core_type = #tpu.core_type<tc>, window_params = [{transform_indices = @transform_0, window_bounds = array<i64: 8, 16>}, {pipeline_mode = #tpu.pipeline_mode<synchronous>, transform_indices = @transform_1, window_bounds = array<i64: 16, 128>}, {pipeline_mode = #tpu.pipeline_mode<synchronous>, transform_indices = @transform_2, window_bounds = array<i64: 1, 128>}, {pipeline_mode = #tpu.pipeline_mode<synchronous>, transform_indices = @transform_3, window_bounds = array<i64: 128, 128>}, {pipeline_mode = #tpu.pipeline_mode<synchronous>, transform_indices = @transform_4, window_bounds = array<i64: 1, 128>}, {pipeline_mode = #tpu.pipeline_mode<synchronous>, transform_indices = @transform_5, window_bounds = array<i64: 128, 8>}, {pipeline_mode = #tpu.pipeline_mode<synchronous>, transform_indices = @transform_6, window_bounds = array<i64: 1, 8>}, {transform_indices = @transform_7, window_bounds = array<i64: 8, 8>}]} {
    %c0 = arith.constant 0 : index
    %c0_0 = arith.constant 0 : index
    %0 = vector.load %arg1[%c0, %c0_0] : memref<8x16xf32, #tpu.memory_space<vmem>>, vector<8x16xf32>
    %c0_1 = arith.constant 0 : index
    %c0_2 = arith.constant 0 : index
    %1 = vector.load %arg2[%c0_1, %c0_2] : memref<16x128xf32, #tpu.memory_space<vmem>>, vector<16x128xf32>
    %cst = arith.constant dense<0.000000e+00> : vector<8x128xf32>
    %2 = tpu.matmul %0, %1, %cst {dimension_numbers = #tpu.dot_dimension_numbers<[1], [0], [0], [1], [0, 0, 1, 1], [], []>} : vector<8x16xf32>, vector<16x128xf32>, vector<8x128xf32> -> vector<8x128xf32>
    %c0_3 = arith.constant 0 : index
    %c0_4 = arith.constant 0 : index
    %3 = vector.load %arg3[%c0_3, %c0_4] : memref<1x128xf32, #tpu.memory_space<vmem>>, vector<1x128xf32>
    %4 = vector.broadcast %3 : vector<1x128xf32> to vector<8x128xf32>
    %5 = arith.addf %2, %4 : vector<8x128xf32>
    %6 = math.tanh %5 : vector<8x128xf32>
    %c0_5 = arith.constant 0 : index
    %c0_6 = arith.constant 0 : index
    %7 = vector.load %arg4[%c0_5, %c0_6] : memref<128x128xf32, #tpu.memory_space<vmem>>, vector<128x128xf32>
    %cst_7 = arith.constant dense<0.000000e+00> : vector<8x128xf32>
    %8 = tpu.matmul %6, %7, %cst_7 {dimension_numbers = #tpu.dot_dimension_numbers<[1], [0], [0], [1], [0, 0, 1, 1], [], []>} : vector<8x128xf32>, vector<128x128xf32>, vector<8x128xf32> -> vector<8x128xf32>
    %c0_8 = arith.constant 0 : index
    %c0_9 = arith.constant 0 : index
    %9 = vector.load %arg5[%c0_8, %c0_9] : memref<1x128xf32, #tpu.memory_space<vmem>>, vector<1x128xf32>
    %10 = vector.broadcast %9 : vector<1x128xf32> to vector<8x128xf32>
    %11 = arith.addf %8, %10 : vector<8x128xf32>
    %12 = math.tanh %11 : vector<8x128xf32>
    %c0_10 = arith.constant 0 : index
    %c0_11 = arith.constant 0 : index
    %13 = vector.load %arg6[%c0_10, %c0_11] : memref<128x8xf32, #tpu.memory_space<vmem>>, vector<128x8xf32>
    %cst_12 = arith.constant dense<0.000000e+00> : vector<8x8xf32>
    %14 = tpu.matmul %12, %13, %cst_12 {dimension_numbers = #tpu.dot_dimension_numbers<[1], [0], [0], [1], [0, 0, 1, 1], [], []>} : vector<8x128xf32>, vector<128x8xf32>, vector<8x8xf32> -> vector<8x8xf32>
    %c0_13 = arith.constant 0 : index
    %c0_14 = arith.constant 0 : index
    %15 = vector.load %arg7[%c0_13, %c0_14] : memref<1x8xf32, #tpu.memory_space<vmem>>, vector<1x8xf32>
    %16 = vector.broadcast %15 : vector<1x8xf32> to vector<8x8xf32>
    %17 = arith.addf %14, %16 : vector<8x8xf32>
    %18 = math.tanh %17 : vector<8x8xf32>
    %c0_15 = arith.constant 0 : index
    %c0_16 = arith.constant 0 : index
    %19 = vector.load %arg8[%c0_15, %c0_16] : memref<8x8xf32, #tpu.memory_space<vmem>>, vector<8x8xf32>
    tpu.vector_store %arg8[%c0_15, %c0_16], %18 {strides = array<i32>} : memref<8x8xf32, #tpu.memory_space<vmem>>, vector<8x8xf32>,
    return
  }
  func.func @transform_0(%arg0: i32) -> (i32, i32) {
    %c0_i32 = arith.constant 0 : i32
    %c0_i32_0 = arith.constant 0 : i32
    return %arg0, %c0_i32 : i32, i32
  }
  func.func @transform_1(%arg0: i32) -> (i32, i32) {
    %c0_i32 = arith.constant 0 : i32
    %c0_i32_0 = arith.constant 0 : i32
    %c0_i32_1 = arith.constant 0 : i32
    return %c0_i32, %c0_i32_0 : i32, i32
  }
  func.func @transform_2(%arg0: i32) -> (i32, i32) {
    %c0_i32 = arith.constant 0 : i32
    %c0_i32_0 = arith.constant 0 : i32
    %c0_i32_1 = arith.constant 0 : i32
    return %c0_i32, %c0_i32_0 : i32, i32
  }
  func.func @transform_3(%arg0: i32) -> (i32, i32) {
    %c0_i32 = arith.constant 0 : i32
    %c0_i32_0 = arith.constant 0 : i32
    %c0_i32_1 = arith.constant 0 : i32
    return %c0_i32, %c0_i32_0 : i32, i32
  }
  func.func @transform_4(%arg0: i32) -> (i32, i32) {
    %c0_i32 = arith.constant 0 : i32
    %c0_i32_0 = arith.constant 0 : i32
    %c0_i32_1 = arith.constant 0 : i32
    return %c0_i32, %c0_i32_0 : i32, i32
  }
  func.func @transform_5(%arg0: i32) -> (i32, i32) {
    %c0_i32 = arith.constant 0 : i32
    %c0_i32_0 = arith.constant 0 : i32
    %c0_i32_1 = arith.constant 0 : i32
    return %c0_i32, %c0_i32_0 : i32, i32
  }
  func.func @transform_6(%arg0: i32) -> (i32, i32) {
    %c0_i32 = arith.constant 0 : i32
    %c0_i32_0 = arith.constant 0 : i32
    %c0_i32_1 = arith.constant 0 : i32
    return %c0_i32, %c0_i32_0 : i32, i32
  }
  func.func @transform_7(%arg0: i32) -> (i32, i32) {
    %c0_i32 = arith.constant 0 : i32
    %c0_i32_0 = arith.constant 0 : i32
    return %arg0, %c0_i32 : i32, i32
  }
}

module attributes {stable_mosaic.version = 11 : i64} {
  func.func @_branch_net_kernel(%arg0: i32, %arg1: memref<8x16xf32, #tpu.memory_space<vmem>>, %arg2: memref<16x128xf32, #tpu.memory_space<vmem>>, %arg3: memref<1x128xf32, #tpu.memory_space<vmem>>, %arg4: memref<128x128xf32, #tpu.memory_space<vmem>>, %arg5: memref<1x128xf32, #tpu.memory_space<vmem>>, %arg6: memref<128x8xf32, #tpu.memory_space<vmem>>, %arg7: memref<1x8xf32, #tpu.memory_space<vmem>>, %arg8: memref<8x8xf32, #tpu.memory_space<vmem>>) attributes {dimension_semantics = [#tpu.dimension_semantics<parallel>], iteration_bounds = array<i64: 1>, scalar_prefetch = 0 : i64, scratch_operands = 0 : i64, tpu.core_type = #tpu.core_type<tc>, window_params = [{transform_indices = @transform_0, window_bounds = array<i64: 8, 16>}, {pipeline_mode = #tpu.pipeline_mode<synchronous>, transform_indices = @transform_1, window_bounds = array<i64: 16, 128>}, {pipeline_mode = #tpu.pipeline_mode<synchronous>, transform_indices = @transform_2, window_bounds = array<i64: 1, 128>}, {pipeline_mode = #tpu.pipeline_mode<synchronous>, transform_indices = @transform_3, window_bounds = array<i64: 128, 128>}, {pipeline_mode = #tpu.pipeline_mode<synchronous>, transform_indices = @transform_4, window_bounds = array<i64: 1, 128>}, {pipeline_mode = #tpu.pipeline_mode<synchronous>, transform_indices = @transform_5, window_bounds = array<i64: 128, 8>}, {pipeline_mode = #tpu.pipeline_mode<synchronous>, transform_indices = @transform_6, window_bounds = array<i64: 1, 8>}, {transform_indices = @transform_7, window_bounds = array<i64: 8, 8>}]} {
    %c0 = arith.constant 0 : index
    %c0_0 = arith.constant 0 : index
    %0 = vector.load %arg1[%c0, %c0_0] : memref<8x16xf32, #tpu.memory_space<vmem>>, vector<8x16xf32>
    %c0_1 = arith.constant 0 : index
    %c0_2 = arith.constant 0 : index
    %1 = vector.load %arg2[%c0_1, %c0_2] : memref<16x128xf32, #tpu.memory_space<vmem>>, vector<16x128xf32>
    %cst = arith.constant dense<0.000000e+00> : vector<8x128xf32>
    %2 = tpu.matmul %0, %1, %cst {dimension_numbers = #tpu.dot_dimension_numbers<[1], [0], [0], [1], [0, 0, 1, 1], [], []>} : vector<8x16xf32>, vector<16x128xf32>, vector<8x128xf32> -> vector<8x128xf32>
    %c0_3 = arith.constant 0 : index
    %c0_4 = arith.constant 0 : index
    %3 = vector.load %arg3[%c0_3, %c0_4] : memref<1x128xf32, #tpu.memory_space<vmem>>, vector<1x128xf32>
    %4 = vector.broadcast %3 : vector<1x128xf32> to vector<8x128xf32>
    %5 = arith.addf %2, %4 : vector<8x128xf32>
    %6 = math.tanh %5 : vector<8x128xf32>
    %c0_5 = arith.constant 0 : index
    %c0_6 = arith.constant 0 : index
    %7 = vector.load %arg4[%c0_5, %c0_6] : memref<128x128xf32, #tpu.memory_space<vmem>>, vector<128x128xf32>
    %cst_7 = arith.constant dense<0.000000e+00> : vector<8x128xf32>
    %8 = tpu.matmul %6, %7, %cst_7 {dimension_numbers = #tpu.dot_dimension_numbers<[1], [0], [0], [1], [0, 0, 1, 1], [], []>} : vector<8x128xf32>, vector<128x128xf32>, vector<8x128xf32> -> vector<8x128xf32>
    %c0_8 = arith.constant 0 : index
    %c0_9 = arith.constant 0 : index
    %9 = vector.load %arg5[%c0_8, %c0_9] : memref<1x128xf32, #tpu.memory_space<vmem>>, vector<1x128xf32>
    %10 = vector.broadcast %9 : vector<1x128xf32> to vector<8x128xf32>
    %11 = arith.addf %8, %10 : vector<8x128xf32>
    %12 = math.tanh %11 : vector<8x128xf32>
    %c0_10 = arith.constant 0 : index
    %c0_11 = arith.constant 0 : index
    %13 = vector.load %arg6[%c0_10, %c0_11] : memref<128x8xf32, #tpu.memory_space<vmem>>, vector<128x8xf32>
    %cst_12 = arith.constant dense<0.000000e+00> : vector<8x8xf32>
    %14 = tpu.matmul %12, %13, %cst_12 {dimension_numbers = #tpu.dot_dimension_numbers<[1], [0], [0], [1], [0, 0, 1, 1], [], []>} : vector<8x128xf32>, vector<128x8xf32>, vector<8x8xf32> -> vector<8x8xf32>
    %c0_13 = arith.constant 0 : index
    %c0_14 = arith.constant 0 : index
    %15 = vector.load %arg7[%c0_13, %c0_14] : memref<1x8xf32, #tpu.memory_space<vmem>>, vector<1x8xf32>
    %16 = vector.broadcast %15 : vector<1x8xf32> to vector<8x8xf32>
    %17 = arith.addf %14, %16 : vector<8x8xf32>
    %18 = math.tanh %17 : vector<8x8xf32>
    %c0_15 = arith.constant 0 : index
    %c0_16 = arith.constant 0 : index
    %19 = vector.load %arg8[%c0_15, %c0_16] : memref<8x8xf32, #tpu.memory_space<vmem>>, vector<8x8xf32>
    tpu.vector_store %arg8[%c0_15, %c0_16], %18 {strides = array<i32>} : memref<8x8xf32, #tpu.memory_space<vmem>>, vector<8x8xf32>,
    return
  }
  func.func @transform_0(%arg0: i32) -> (i32, i32) {
    %c0_i32 = arith.constant 0 : i32
    %c0_i32_0 = arith.constant 0 : i32
    return %arg0, %c0_i32 : i32, i32
  }
  func.func @transform_1(%arg0: i32) -> (i32, i32) {
    %c0_i32 = arith.constant 0 : i32
    %c0_i32_0 = arith.constant 0 : i32
    %c0_i32_1 = arith.constant 0 : i32
    return %c0_i32, %c0_i32_0 : i32, i32
  }
  func.func @transform_2(%arg0: i32) -> (i32, i32) {
    %c0_i32 = arith.constant 0 : i32
    %c0_i32_0 = arith.constant 0 : i32
    %c0_i32_1 = arith.constant 0 : i32
    return %c0_i32, %c0_i32_0 : i32, i32
  }
  func.func @transform_3(%arg0: i32) -> (i32, i32) {
    %c0_i32 = arith.constant 0 : i32
    %c0_i32_0 = arith.constant 0 : i32
    %c0_i32_1 = arith.constant 0 : i32
    return %c0_i32, %c0_i32_0 : i32, i32
  }
  func.func @transform_4(%arg0: i32) -> (i32, i32) {
    %c0_i32 = arith.constant 0 : i32
    %c0_i32_0 = arith.constant 0 : i32
    %c0_i32_1 = arith.constant 0 : i32
    return %c0_i32, %c0_i32_0 : i32, i32
  }
  func.func @transform_5(%arg0: i32) -> (i32, i32) {
    %c0_i32 = arith.constant 0 : i32
    %c0_i32_0 = arith.constant 0 : i32
    %c0_i32_1 = arith.constant 0 : i32
    return %c0_i32, %c0_i32_0 : i32, i32
  }
  func.func @transform_6(%arg0: i32) -> (i32, i32) {
    %c0_i32 = arith.constant 0 : i32
    %c0_i32_0 = arith.constant 0 : i32
    %c0_i32_1 = arith.constant 0 : i32
    return %c0_i32, %c0_i32_0 : i32, i32
  }
  func.func @transform_7(%arg0: i32) -> (i32, i32) {
    %c0_i32 = arith.constant 0 : i32
    %c0_i32_0 = arith.constant 0 : i32
    return %arg0, %c0_i32 : i32, i32
  }
}

</mosaic_0001>

<bundles_post_ra>
// kernel: tpu_custom_call.1
= control target key start
LH: loop header
LB: loop body
LE: loop exit
PB: predicated region body
PF: predicated region fallthrough
CT: control target
= control target key end

     0   :  { %12 = vsyncpa [#allocation3], 0  ;;  %s742_s0 = inlined_call_operand.vmem [shape: f32[8,16], index: 0, kind: input, shape index: {}]   ;;  %s743_s1 = inlined_call_operand.hbm [shape: f32[16,128], index: 1, kind: input, shape index: {}]   ;;  %s744_s2 = inlined_call_operand.vmem [shape: f32[1,128], index: 2, kind: input, shape index: {}]   ;;  %s745_s3 = inlined_call_operand.vmem [shape: f32[128,128], index: 3, kind: input, shape index: {}]   ;;  %s746_s4 = inlined_call_operand.hbm [shape: f32[1,128], index: 4, kind: input, shape index: {}]   ;;  %s747_s5 = inlined_call_operand.vmem [shape: f32[128,8], index: 5, kind: input, shape index: {}]   ;;  %s748_s6 = inlined_call_operand.vmem [shape: f32[1,8], index: 6, kind: input, shape index: {}]   ;;  %s749_s7 = inlined_call_operand.hbm [shape: f32[8,8], index: 7, kind: output, shape index: {}]  }
   0x1   :  { %13 = vsyncpa [#allocation6], 0 }
   0x2   :  { %14 = vsyncpa [#allocation4], 0  ;;  %s541_s24 = smov [#allocation2]  }
   0x3   :  { %s22_s25 = sshll.u32 %s541_s24, 4  ;;  %s23_s25 = int_to_ptr.vmem [resolvable:$true] %s22_s25 }
   0x4   :  { %s483_s26 = scalar_lea.vmem %s23_s25, 256  ;;  %p488_p1 = scmp.lt.s32.totalorder %s23_s25, %s23_s25 }
   0x5   :  { %p484_p0 = scmp.ne.s32.totalorder %s23_s25, %s483_s26  ;;  %p489_p2 = scmp.lt.s32.totalorder %s483_s26, %s483_s26 }
   0x7   :  { %p490_p3 = por %p489_p2, %p488_p1 }
   0x9   :  { %p491_p4 = pnand %p490_p3, %p484_p0 }
   0xb   :  { %494 = shalt.err (!%p491_p4)
}
   0xc   :  { %s542_s27 = smov 128   ;;  %s543_s28 = smov 8  }
   0xd   :  { %28 = dma.hbm_to_vmem [thread:$0]  %s743_s1, 256, %s23_s25, [#allocation3], %s542_s27, %s542_s27, %s543_s28  }
   0xe   :  { %s544_s8 = smov [#allocation5]  }
   0xf   :  { %s39_s9 = sshll.u32 %s544_s8, 4  ;;  %s40_s9 = int_to_ptr.vmem [resolvable:$true] %s39_s9 }
  0x10   :  { %s503_s10 = scalar_lea.vmem %s40_s9, 16  ;;  %s507_s11 = scalar_lea.vmem %s40_s9, 32 }
  0x11   :  { %p504_p5 = scmp.ne.s32.totalorder %s40_s9, %s503_s10  ;;  %p508_p6 = scmp.lt.s32.totalorder %s40_s9, %s40_s9 }
  0x12   :  { %p509_p7 = scmp.lt.s32.totalorder %s507_s11, %s503_s10 }
  0x14   :  { %p510_p8 = por %p509_p7, %p508_p6 }
  0x16   :  { %p511_p9 = pnand %p510_p8, %p504_p5 }
  0x18   :  { %514 = shalt.err (!%p511_p9)
}
  0x19   :  { %42 = dma.hbm_to_vmem [thread:$0]  %s746_s4, 16, %s40_s9, [#allocation6]  }
  0x1a   :  { %535 = dma.done.wait [#allocation3], 256  }
  0x1b   :  { %536 = vsyncadd [#allocation3], 4294967040 }
  0x1c   :  { %537 = dma.done.wait [#allocation6], 16  }
  0x1d   :  { %538 = vsyncadd [#allocation6], 4294967280  ;;  %v545_v0 = vmov 0.0   ;;  %vm546_vm0 = vmmov 0   ;;  %v55_v1 = vld [vmem:[#allocation2 + $0x8] sm:$0xff]  ;;  %v54_v2 = vld [vmem:[#allocation2] sm:$0xff] }
  0x1e   :  { %385 = vmatprep.subr.mxu0 %v545_v0  ;;  %389 = vmatprep.mubr.msk.f32.mxu0 %vm546_vm0, %v545_v0  ;;  %v53_v3 = vld [vmem:[%s742_s0] sm:$0xff]  ;;  %vm63_vm1 = vcmask 130048   ;;  %v153_v4 = vld [vmem:[%s745_s3 + $0x78] sm:$0xff]  ;;  %v152_v5 = vld [vmem:[%s745_s3 + $0x70] sm:$0xff]  ;;  %vm326_vm2 = vcmask 64512  }
  0x1f   :  { %392 = vmatprep.subr.mxu1 %v545_v0  ;;  %424 = vmatprep.mubr.msk.f32.mxu1 %vm546_vm0, %v545_v0  ;;  %v151_v6 = vld [vmem:[%s745_s3 + $0x68] sm:$0xff]  ;;  %v150_v7 = vld [vmem:[%s745_s3 + $0x60] sm:$0xff]  ;;  %v149_v8 = vld [vmem:[%s745_s3 + $0x58] sm:$0xff] }
  0x20   :  { %386 = vmatpush3.msra.mxu0 %v55_v1  ;;  %393 = vmatpush3.msra.mxu1 %v153_v4  ;;  %v148_v9 = vld [vmem:[%s745_s3 + $0x50] sm:$0xff]  ;;  %v147_v10 = vld [vmem:[%s745_s3 + $0x48] sm:$0xff]  ;;  %v146_v11 = vld [vmem:[%s745_s3 + $0x40] sm:$0xff] }
  0x21   :  { %387 = vmatprep.subr.mxu0 %v545_v0  ;;  %394 = vmatprep.subr.mxu1 %v545_v0  ;;  %v145_v12 = vld [vmem:[%s745_s3 + $0x38] sm:$0xff]  ;;  %v144_v13 = vld [vmem:[%s745_s3 + $0x30] sm:$0xff]  ;;  %v143_v14 = vld [vmem:[%s745_s3 + $0x28] sm:$0xff] }
  0x22   :  { %388 = vmatpush3.msra.mxu0 %v54_v2  ;;  %395 = vmatpush3.msra.mxu1 %v152_v5  ;;  %v142_v15 = vld [vmem:[%s745_s3 + $0x20] sm:$0xff]  ;;  %v141_v16 = vld [vmem:[%s745_s3 + $0x18] sm:$0xff]  ;;  %v140_v17 = vld [vmem:[%s745_s3 + $0x10] sm:$0xff] }
  0x23   :  { %390 = vmatmul.mubr.msk.f32.vlgmr.msra.gmra.mxu0 %vm63_vm1, %v53_v3  ;;  %396 = vmatprep.subr.mxu1 %v545_v0  ;;  %v139_v18 = vld [vmem:[%s745_s3 + $0x8] sm:$0xff]  ;;  %v138_v19 = vld [vmem:[%s745_s3] sm:$0xff]  ;;  %v247_v20 = vld [vmem:[%s747_s5 + $0x78] sm:$0xff] }
  0x24   :  { %427 = vmatprep.subr.mxu0 %v545_v0  ;;  %397 = vmatpush3.msra.mxu1 %v151_v6  ;;  %v246_v21 = vld [vmem:[%s747_s5 + $0x70] sm:$0xff]  ;;  %v245_v22 = vld [vmem:[%s747_s5 + $0x68] sm:$0xff]  ;;  %v244_v23 = vld [vmem:[%s747_s5 + $0x60] sm:$0xff] }
  0x25   :  { %459 = vmatprep.mubr.msk.f32.mxu0 %vm546_vm0, %v545_v0  ;;  %398 = vmatprep.subr.mxu1 %v545_v0  ;;  %v243_v24 = vld [vmem:[%s747_s5 + $0x58] sm:$0xff]  ;;  %v242_v25 = vld [vmem:[%s747_s5 + $0x50] sm:$0xff]  ;;  %v241_v26 = vld [vmem:[%s747_s5 + $0x48] sm:$0xff] }
  0x26   :  { %399 = vmatpush3.msra.mxu1 %v150_v7  ;;  %428 = vmatpush3.msra.mxu0 %v247_v20  ;;  %v344_v27 = vld [vmem:[%s744_s2] ss:$0 sm:$0xff]  ;;  %v239_v33 = vld [vmem:[%s747_s5 + $0x38] sm:$0xff]  ;;  %v238_v34 = vld [vmem:[%s747_s5 + $0x30] sm:$0xff] }
  0x27   :  { %400 = vmatprep.subr.mxu1 %v545_v0  ;;  %429 = vmatprep.subr.mxu0 %v545_v0  ;;  %v240_v32 = vld [vmem:[%s747_s5 + $0x40] sm:$0xff]  ;;  %v237_v35 = vld [vmem:[%s747_s5 + $0x28] sm:$0xff]  ;;  %v235_v37 = vld [vmem:[%s747_s5 + $0x18] sm:$0xff] }
  0x28   :  { %401 = vmatpush3.msra.mxu1 %v149_v8  ;;  %430 = vmatpush3.msra.mxu0 %v246_v21  ;;  %v236_v36 = vld [vmem:[%s747_s5 + $0x20] sm:$0xff]  ;;  %v234_v38 = vld [vmem:[%s747_s5 + $0x10] sm:$0xff]  ;;  %v233_v39 = vld [vmem:[%s747_s5 + $0x8] sm:$0xff] }
  0x29   :  { %402 = vmatprep.subr.mxu1 %v545_v0  ;;  %431 = vmatprep.subr.mxu0 %v545_v0  ;;  %v232_v40 = vld [vmem:[%s747_s5] sm:$0xff]  ;;  %v346_v41 = vld [vmem:[#allocation5] ss:$0 sm:$0xff]  ;;  %s547_s5 = smov [#allocation7]  }
  0x2a   :  { %403 = vmatpush3.msra.mxu1 %v148_v9  ;;  %432 = vmatpush3.msra.mxu0 %v245_v22  ;;  %v347_v46 = vld [vmem:[%s748_s6] ss:$0 sm:$0xff]  ;;  %s334_s26 = sshll.u32 %s547_s5, 4  ;;  %s335_s26 = int_to_ptr.vmem [resolvable:$true] %s334_s26 }
  0x2b   :  { %404 = vmatprep.subr.mxu1 %v545_v0  ;;  %433 = vmatprep.subr.mxu0 %v545_v0  ;;  %s515_s27 = scalar_lea.vmem %s335_s26, 128  ;;  %p520_p11 = scmp.lt.s32.totalorder %s335_s26, %s335_s26 }
  0x2c   :  { %405 = vmatpush3.msra.mxu1 %v147_v10  ;;  %434 = vmatpush3.msra.mxu0 %v244_v23  ;;  %p516_p10 = scmp.ne.s32.totalorder %s335_s26, %s515_s27  ;;  %p521_p12 = scmp.lt.s32.totalorder %s515_s27, %s515_s27 }
  0x2d   :  { %406 = vmatprep.subr.mxu1 %v545_v0  ;;  %435 = vmatprep.subr.mxu0 %v545_v0 }
  0x2e   :  { %407 = vmatpush3.msra.mxu1 %v146_v11  ;;  %436 = vmatpush3.msra.mxu0 %v243_v24  ;;  %p522_p13 = por %p521_p12, %p520_p11 }
  0x2f   :  { %408 = vmatprep.subr.mxu1 %v545_v0  ;;  %437 = vmatprep.subr.mxu0 %v545_v0 }
  0x30   :  { %409 = vmatpush3.msra.mxu1 %v145_v12  ;;  %438 = vmatpush3.msra.mxu0 %v242_v25  ;;  %p523_p0 = pnand %p522_p13, %p516_p10 }
  0x31   :  { %410 = vmatprep.subr.mxu1 %v545_v0  ;;  %439 = vmatprep.subr.mxu0 %v545_v0 }
  0x32   :  { %411 = vmatpush3.msra.mxu1 %v144_v13  ;;  %440 = vmatpush3.msra.mxu0 %v241_v26 }
  0x33   :  { %412 = vmatprep.subr.mxu1 %v545_v0  ;;  %441 = vmatprep.subr.mxu0 %v545_v0 }
  0x34   :  { %413 = vmatpush3.msra.mxu1 %v143_v14  ;;  %442 = vmatpush3.msra.mxu0 %v240_v32 }
  0x35   :  { %414 = vmatprep.subr.mxu1 %v545_v0  ;;  %443 = vmatprep.subr.mxu0 %v545_v0 }
  0x36   :  { %415 = vmatpush3.msra.mxu1 %v142_v15  ;;  %444 = vmatpush3.msra.mxu0 %v239_v33 }
  0x37   :  { %416 = vmatprep.subr.mxu1 %v545_v0  ;;  %445 = vmatprep.subr.mxu0 %v545_v0 }
  0x38   :  { %417 = vmatpush3.msra.mxu1 %v141_v16  ;;  %446 = vmatpush3.msra.mxu0 %v238_v34 }
  0x39   :  { %418 = vmatprep.subr.mxu1 %v545_v0  ;;  %447 = vmatprep.subr.mxu0 %v545_v0 }
  0x3a   :  { %419 = vmatpush3.msra.mxu1 %v140_v17  ;;  %448 = vmatpush3.msra.mxu0 %v237_v35 }
  0x3b   :  { %420 = vmatprep.subr.mxu1 %v545_v0  ;;  %449 = vmatprep.subr.mxu0 %v545_v0 }
  0x3c   :  { %421 = vmatpush3.msra.mxu1 %v139_v18  ;;  %450 = vmatpush3.msra.mxu0 %v236_v36 }
  0x3d   :  { %422 = vmatprep.subr.mxu1 %v545_v0  ;;  %451 = vmatprep.subr.mxu0 %v545_v0 }
  0x3e   :  { %423 = vmatpush3.msra.mxu1 %v138_v19  ;;  %452 = vmatpush3.msra.mxu0 %v235_v37 }
  0x3f   :  { %453 = vmatprep.subr.mxu0 %v545_v0 }
  0x40   :  { %454 = vmatpush3.msra.mxu0 %v234_v38 }
  0x41   :  { %455 = vmatprep.subr.mxu0 %v545_v0 }
  0x42   :  { %456 = vmatpush3.msra.mxu0 %v233_v39 }
  0x43   :  { %457 = vmatprep.subr.mxu0 %v545_v0 }
  0x44   :  { %458 = vmatpush3.msra.mxu0 %v232_v40 }
  0xe3   :  { %v133_v28 = vpop.f32.mrf.mxu0 }
  0xe4   :  { %v134_v29 = vadd.f32 %v344_v27, %v133_v28 }
  0xe5   :  { %v391_v30 = vpop.f32.mrf.mxu0 }
  0xe6   :  { %469 = vtanh.f32 %v134_v29 }
  0xf3   :  { %v470_v31 = vpop.eup %469 }
  0xf4   :  { %425 = vmatmul.mubr.f32.vlgmr.msra.gmra.mxu1 %v470_v31 }
 0x1b4   :  { %v227_v42 = vpop.f32.mrf.mxu1 }
 0x1b5   :  { %v228_v43 = vadd.f32 %v346_v41, %v227_v42 }
 0x1b6   :  { %v426_v44 = vpop.f32.mrf.mxu1 }
 0x1b7   :  { %471 = vtanh.f32 %v228_v43 }
 0x1c4   :  { %v472_v45 = vpop.eup %471 }
 0x1c5   :  { %460 = vmatmul.mubr.f32.vlgmr.msra.gmra.mxu0 %v472_v45 }
 0x285   :  { %v321_v47 = vpop.f32.mrf.mxu0 }
 0x286   :  { %v322_v48 = vadd.f32 %v347_v46, %v321_v47 }
 0x287   :  { %v461_v49 = vpop.f32.mrf.mxu0 }
 0x288   :  { %473 = vtanh.f32 %v322_v48 }
 0x295   :  { %v474_v50 = vpop.eup %473 }
 0x296   :  { %327 = vst.msk [vmem:[#allocation7] sm:$0xff] %vm326_vm2, %v474_v50 }
 0x297   :  { %526 = shalt.err (!%p523_p0)
}
 0x298   :  { %337 = dma.vmem_to_hbm [thread:$0]  %s335_s26, 128, %s749_s7, [#allocation4]  }
 0x299   :  { %539 = dma.done.wait [#allocation4], 128  }
 0x29a   :  { %540 = vsyncadd [#allocation4], 4294967168 }
 0x29b   :  { %341 = vsyncpa [#allocation3], 1 }
 0x29c   :  { %342 = vsyncpa [#allocation6], 1 }
 0x29d   :  { %343 = vsyncpa [#allocation4], 1 }

// kernel: tpu_custom_call.1
= control target key start
LH: loop header
LB: loop body
LE: loop exit
PB: predicated region body
PF: predicated region fallthrough
CT: control target
= control target key end

     0   :  { %12 = vsyncpa [#allocation3], 0  ;;  %s742_s0 = inlined_call_operand.vmem [shape: f32[8,16], index: 0, kind: input, shape index: {}]   ;;  %s743_s1 = inlined_call_operand.hbm [shape: f32[16,128], index: 1, kind: input, shape index: {}]   ;;  %s744_s2 = inlined_call_operand.vmem [shape: f32[1,128], index: 2, kind: input, shape index: {}]   ;;  %s745_s3 = inlined_call_operand.vmem [shape: f32[128,128], index: 3, kind: input, shape index: {}]   ;;  %s746_s4 = inlined_call_operand.hbm [shape: f32[1,128], index: 4, kind: input, shape index: {}]   ;;  %s747_s5 = inlined_call_operand.vmem [shape: f32[128,8], index: 5, kind: input, shape index: {}]   ;;  %s748_s6 = inlined_call_operand.vmem [shape: f32[1,8], index: 6, kind: input, shape index: {}]   ;;  %s749_s7 = inlined_call_operand.hbm [shape: f32[8,8], index: 7, kind: output, shape index: {}]  }
   0x1   :  { %13 = vsyncpa [#allocation6], 0 }
   0x2   :  { %14 = vsyncpa [#allocation4], 0  ;;  %s541_s24 = smov [#allocation2]  }
   0x3   :  { %s22_s25 = sshll.u32 %s541_s24, 4  ;;  %s23_s25 = int_to_ptr.vmem [resolvable:$true] %s22_s25 }
   0x4   :  { %s483_s26 = scalar_lea.vmem %s23_s25, 256  ;;  %p488_p1 = scmp.lt.s32.totalorder %s23_s25, %s23_s25 }
   0x5   :  { %p484_p0 = scmp.ne.s32.totalorder %s23_s25, %s483_s26  ;;  %p489_p2 = scmp.lt.s32.totalorder %s483_s26, %s483_s26 }
   0x7   :  { %p490_p3 = por %p489_p2, %p488_p1 }
   0x9   :  { %p491_p4 = pnand %p490_p3, %p484_p0 }
   0xb   :  { %494 = shalt.err (!%p491_p4)
}
   0xc   :  { %s542_s27 = smov 128   ;;  %s543_s28 = smov 8  }
   0xd   :  { %28 = dma.hbm_to_vmem [thread:$0]  %s743_s1, 256, %s23_s25, [#allocation3], %s542_s27, %s542_s27, %s543_s28  }
   0xe   :  { %s544_s8 = smov [#allocation5]  }
   0xf   :  { %s39_s9 = sshll.u32 %s544_s8, 4  ;;  %s40_s9 = int_to_ptr.vmem [resolvable:$true] %s39_s9 }
  0x10   :  { %s503_s10 = scalar_lea.vmem %s40_s9, 16  ;;  %s507_s11 = scalar_lea.vmem %s40_s9, 32 }
  0x11   :  { %p504_p5 = scmp.ne.s32.totalorder %s40_s9, %s503_s10  ;;  %p508_p6 = scmp.lt.s32.totalorder %s40_s9, %s40_s9 }
  0x12   :  { %p509_p7 = scmp.lt.s32.totalorder %s507_s11, %s503_s10 }
  0x14   :  { %p510_p8 = por %p509_p7, %p508_p6 }
  0x16   :  { %p511_p9 = pnand %p510_p8, %p504_p5 }
  0x18   :  { %514 = shalt.err (!%p511_p9)
}
  0x19   :  { %42 = dma.hbm_to_vmem [thread:$0]  %s746_s4, 16, %s40_s9, [#allocation6]  }
  0x1a   :  { %535 = dma.done.wait [#allocation3], 256  }
  0x1b   :  { %536 = vsyncadd [#allocation3], 4294967040 }
  0x1c   :  { %537 = dma.done.wait [#allocation6], 16  }
  0x1d   :  { %538 = vsyncadd [#allocation6], 4294967280  ;;  %v545_v0 = vmov 0.0   ;;  %vm546_vm0 = vmmov 0   ;;  %v55_v1 = vld [vmem:[#allocation2 + $0x8] sm:$0xff]  ;;  %v54_v2 = vld [vmem:[#allocation2] sm:$0xff] }
  0x1e   :  { %385 = vmatprep.subr.mxu0 %v545_v0  ;;  %389 = vmatprep.mubr.msk.f32.mxu0 %vm546_vm0, %v545_v0  ;;  %v53_v3 = vld [vmem:[%s742_s0] sm:$0xff]  ;;  %vm63_vm1 = vcmask 130048   ;;  %v153_v4 = vld [vmem:[%s745_s3 + $0x78] sm:$0xff]  ;;  %v152_v5 = vld [vmem:[%s745_s3 + $0x70] sm:$0xff]  ;;  %vm326_vm2 = vcmask 64512  }
  0x1f   :  { %392 = vmatprep.subr.mxu1 %v545_v0  ;;  %424 = vmatprep.mubr.msk.f32.mxu1 %vm546_vm0, %v545_v0  ;;  %v151_v6 = vld [vmem:[%s745_s3 + $0x68] sm:$0xff]  ;;  %v150_v7 = vld [vmem:[%s745_s3 + $0x60] sm:$0xff]  ;;  %v149_v8 = vld [vmem:[%s745_s3 + $0x58] sm:$0xff] }
  0x20   :  { %386 = vmatpush3.msra.mxu0 %v55_v1  ;;  %393 = vmatpush3.msra.mxu1 %v153_v4  ;;  %v148_v9 = vld [vmem:[%s745_s3 + $0x50] sm:$0xff]  ;;  %v147_v10 = vld [vmem:[%s745_s3 + $0x48] sm:$0xff]  ;;  %v146_v11 = vld [vmem:[%s745_s3 + $0x40] sm:$0xff] }
  0x21   :  { %387 = vmatprep.subr.mxu0 %v545_v0  ;;  %394 = vmatprep.subr.mxu1 %v545_v0  ;;  %v145_v12 = vld [vmem:[%s745_s3 + $0x38] sm:$0xff]  ;;  %v144_v13 = vld [vmem:[%s745_s3 + $0x30] sm:$0xff]  ;;  %v143_v14 = vld [vmem:[%s745_s3 + $0x28] sm:$0xff] }
  0x22   :  { %388 = vmatpush3.msra.mxu0 %v54_v2  ;;  %395 = vmatpush3.msra.mxu1 %v152_v5  ;;  %v142_v15 = vld [vmem:[%s745_s3 + $0x20] sm:$0xff]  ;;  %v141_v16 = vld [vmem:[%s745_s3 + $0x18] sm:$0xff]  ;;  %v140_v17 = vld [vmem:[%s745_s3 + $0x10] sm:$0xff] }
  0x23   :  { %390 = vmatmul.mubr.msk.f32.vlgmr.msra.gmra.mxu0 %vm63_vm1, %v53_v3  ;;  %396 = vmatprep.subr.mxu1 %v545_v0  ;;  %v139_v18 = vld [vmem:[%s745_s3 + $0x8] sm:$0xff]  ;;  %v138_v19 = vld [vmem:[%s745_s3] sm:$0xff]  ;;  %v247_v20 = vld [vmem:[%s747_s5 + $0x78] sm:$0xff] }
  0x24   :  { %427 = vmatprep.subr.mxu0 %v545_v0  ;;  %397 = vmatpush3.msra.mxu1 %v151_v6  ;;  %v246_v21 = vld [vmem:[%s747_s5 + $0x70] sm:$0xff]  ;;  %v245_v22 = vld [vmem:[%s747_s5 + $0x68] sm:$0xff]  ;;  %v244_v23 = vld [vmem:[%s747_s5 + $0x60] sm:$0xff] }
  0x25   :  { %459 = vmatprep.mubr.msk.f32.mxu0 %vm546_vm0, %v545_v0  ;;  %398 = vmatprep.subr.mxu1 %v545_v0  ;;  %v243_v24 = vld [vmem:[%s747_s5 + $0x58] sm:$0xff]  ;;  %v242_v25 = vld [vmem:[%s747_s5 + $0x50] sm:$0xff]  ;;  %v241_v26 = vld [vmem:[%s747_s5 + $0x48] sm:$0xff] }
  0x26   :  { %399 = vmatpush3.msra.mxu1 %v150_v7  ;;  %428 = vmatpush3.msra.mxu0 %v247_v20  ;;  %v344_v27 = vld [vmem:[%s744_s2] ss:$0 sm:$0xff]  ;;  %v239_v33 = vld [vmem:[%s747_s5 + $0x38] sm:$0xff]  ;;  %v238_v34 = vld [vmem:[%s747_s5 + $0x30] sm:$0xff] }
  0x27   :  { %400 = vmatprep.subr.mxu1 %v545_v0  ;;  %429 = vmatprep.subr.mxu0 %v545_v0  ;;  %v240_v32 = vld [vmem:[%s747_s5 + $0x40] sm:$0xff]  ;;  %v237_v35 = vld [vmem:[%s747_s5 + $0x28] sm:$0xff]  ;;  %v235_v37 = vld [vmem:[%s747_s5 + $0x18] sm:$0xff] }
  0x28   :  { %401 = vmatpush3.msra.mxu1 %v149_v8  ;;  %430 = vmatpush3.msra.mxu0 %v246_v21  ;;  %v236_v36 = vld [vmem:[%s747_s5 + $0x20] sm:$0xff]  ;;  %v234_v38 = vld [vmem:[%s747_s5 + $0x10] sm:$0xff]  ;;  %v233_v39 = vld [vmem:[%s747_s5 + $0x8] sm:$0xff] }
  0x29   :  { %402 = vmatprep.subr.mxu1 %v545_v0  ;;  %431 = vmatprep.subr.mxu0 %v545_v0  ;;  %v232_v40 = vld [vmem:[%s747_s5] sm:$0xff]  ;;  %v346_v41 = vld [vmem:[#allocation5] ss:$0 sm:$0xff]  ;;  %s547_s5 = smov [#allocation7]  }
  0x2a   :  { %403 = vmatpush3.msra.mxu1 %v148_v9  ;;  %432 = vmatpush3.msra.mxu0 %v245_v22  ;;  %v347_v46 = vld [vmem:[%s748_s6] ss:$0 sm:$0xff]  ;;  %s334_s26 = sshll.u32 %s547_s5, 4  ;;  %s335_s26 = int_to_ptr.vmem [resolvable:$true] %s334_s26 }
  0x2b   :  { %404 = vmatprep.subr.mxu1 %v545_v0  ;;  %433 = vmatprep.subr.mxu0 %v545_v0  ;;  %s515_s27 = scalar_lea.vmem %s335_s26, 128  ;;  %p520_p11 = scmp.lt.s32.totalorder %s335_s26, %s335_s26 }
  0x2c   :  { %405 = vmatpush3.msra.mxu1 %v147_v10  ;;  %434 = vmatpush3.msra.mxu0 %v244_v23  ;;  %p516_p10 = scmp.ne.s32.totalorder %s335_s26, %s515_s27  ;;  %p521_p12 = scmp.lt.s32.totalorder %s515_s27, %s515_s27 }
  0x2d   :  { %406 = vmatprep.subr.mxu1 %v545_v0  ;;  %435 = vmatprep.subr.mxu0 %v545_v0 }
  0x2e   :  { %407 = vmatpush3.msra.mxu1 %v146_v11  ;;  %436 = vmatpush3.msra.mxu0 %v243_v24  ;;  %p522_p13 = por %p521_p12, %p520_p11 }
  0x2f   :  { %408 = vmatprep.subr.mxu1 %v545_v0  ;;  %437 = vmatprep.subr.mxu0 %v545_v0 }
  0x30   :  { %409 = vmatpush3.msra.mxu1 %v145_v12  ;;  %438 = vmatpush3.msra.mxu0 %v242_v25  ;;  %p523_p0 = pnand %p522_p13, %p516_p10 }
  0x31   :  { %410 = vmatprep.subr.mxu1 %v545_v0  ;;  %439 = vmatprep.subr.mxu0 %v545_v0 }
  0x32   :  { %411 = vmatpush3.msra.mxu1 %v144_v13  ;;  %440 = vmatpush3.msra.mxu0 %v241_v26 }
  0x33   :  { %412 = vmatprep.subr.mxu1 %v545_v0  ;;  %441 = vmatprep.subr.mxu0 %v545_v0 }
  0x34   :  { %413 = vmatpush3.msra.mxu1 %v143_v14  ;;  %442 = vmatpush3.msra.mxu0 %v240_v32 }
  0x35   :  { %414 = vmatprep.subr.mxu1 %v545_v0  ;;  %443 = vmatprep.subr.mxu0 %v545_v0 }
  0x36   :  { %415 = vmatpush3.msra.mxu1 %v142_v15  ;;  %444 = vmatpush3.msra.mxu0 %v239_v33 }
  0x37   :  { %416 = vmatprep.subr.mxu1 %v545_v0  ;;  %445 = vmatprep.subr.mxu0 %v545_v0 }
  0x38   :  { %417 = vmatpush3.msra.mxu1 %v141_v16  ;;  %446 = vmatpush3.msra.mxu0 %v238_v34 }
  0x39   :  { %418 = vmatprep.subr.mxu1 %v545_v0  ;;  %447 = vmatprep.subr.mxu0 %v545_v0 }
  0x3a   :  { %419 = vmatpush3.msra.mxu1 %v140_v17  ;;  %448 = vmatpush3.msra.mxu0 %v237_v35 }
  0x3b   :  { %420 = vmatprep.subr.mxu1 %v545_v0  ;;  %449 = vmatprep.subr.mxu0 %v545_v0 }
  0x3c   :  { %421 = vmatpush3.msra.mxu1 %v139_v18  ;;  %450 = vmatpush3.msra.mxu0 %v236_v36 }
  0x3d   :  { %422 = vmatprep.subr.mxu1 %v545_v0  ;;  %451 = vmatprep.subr.mxu0 %v545_v0 }
  0x3e   :  { %423 = vmatpush3.msra.mxu1 %v138_v19  ;;  %452 = vmatpush3.msra.mxu0 %v235_v37 }
  0x3f   :  { %453 = vmatprep.subr.mxu0 %v545_v0 }
  0x40   :  { %454 = vmatpush3.msra.mxu0 %v234_v38 }
  0x41   :  { %455 = vmatprep.subr.mxu0 %v545_v0 }
  0x42   :  { %456 = vmatpush3.msra.mxu0 %v233_v39 }
  0x43   :  { %457 = vmatprep.subr.mxu0 %v545_v0 }
  0x44   :  { %458 = vmatpush3.msra.mxu0 %v232_v40 }
  0xe3   :  { %v133_v28 = vpop.f32.mrf.mxu0 }
  0xe4   :  { %v134_v29 = vadd.f32 %v344_v27, %v133_v28 }
  0xe5   :  { %v391_v30 = vpop.f32.mrf.mxu0 }
  0xe6   :  { %469 = vtanh.f32 %v134_v29 }
  0xf3   :  { %v470_v31 = vpop.eup %469 }
  0xf4   :  { %425 = vmatmul.mubr.f32.vlgmr.msra.gmra.mxu1 %v470_v31 }
 0x1b4   :  { %v227_v42 = vpop.f32.mrf.mxu1 }
 0x1b5   :  { %v228_v43 = vadd.f32 %v346_v41, %v227_v42 }
 0x1b6   :  { %v426_v44 = vpop.f32.mrf.mxu1 }
 0x1b7   :  { %471 = vtanh.f32 %v228_v43 }
 0x1c4   :  { %v472_v45 = vpop.eup %471 }
 0x1c5   :  { %460 = vmatmul.mubr.f32.vlgmr.msra.gmra.mxu0 %v472_v45 }
 0x285   :  { %v321_v47 = vpop.f32.mrf.mxu0 }
 0x286   :  { %v322_v48 = vadd.f32 %v347_v46, %v321_v47 }
 0x287   :  { %v461_v49 = vpop.f32.mrf.mxu0 }
 0x288   :  { %473 = vtanh.f32 %v322_v48 }
 0x295   :  { %v474_v50 = vpop.eup %473 }
 0x296   :  { %327 = vst.msk [vmem:[#allocation7] sm:$0xff] %vm326_vm2, %v474_v50 }
 0x297   :  { %526 = shalt.err (!%p523_p0)
}
 0x298   :  { %337 = dma.vmem_to_hbm [thread:$0]  %s335_s26, 128, %s749_s7, [#allocation4]  }
 0x299   :  { %539 = dma.done.wait [#allocation4], 128  }
 0x29a   :  { %540 = vsyncadd [#allocation4], 4294967168 }
 0x29b   :  { %341 = vsyncpa [#allocation3], 1 }
 0x29c   :  { %342 = vsyncpa [#allocation6], 1 }
 0x29d   :  { %343 = vsyncpa [#allocation4], 1 }

</bundles_post_ra>
